<compile_context>
chip_gen: v6e
topology: v6e:2x2x1
jax: 0.10.0
libtpu: 0.0.40
codegen_flags: <defaults>
</compile_context>

<pallas_src>
import jax
import jax.numpy as jnp
from jax.experimental import pallas as pl
from jax.experimental.pallas import tpu as pltpu

CIN = 4          # input channels (input_dim)
CIN_PAD = 8      # input channels zero-padded to a full sublane group
COUT = 32        # output channels (output_dim == filters in the script)
H = W = 16       # board size
HW = H * W       # 256 -> lane dim
EPS = 1e-5       # BatchNorm eps


# ----------------------------- kernel ---------------------------------------

def _roll(x, shift):
    """Circular roll (np.roll semantics) along the last (lane) axis via XLU."""
    n = x.shape[-1]
    return pltpu.roll(x, shift % n, x.ndim - 1)


def basic_conv2d_kernel(x_ref, w_ref, b_ref, o_ref):
    # Lane position within each image row (flat columns are ordered hh*W + w).
    col = jax.lax.broadcasted_iota(jnp.int32, (1, HW), 1) % W
    w_first = col == 0          # w == 0
    w_last = col == W - 1       # w == W-1

    x = x_ref[0]                                              # (CIN_PAD, HW) f32

    # W-direction circular taps: a flat lane roll is correct except at the row
    # boundary, which one select fixes (wraparound stays inside the row).
    left = jnp.where(w_first, _roll(x, -(W - 1)), _roll(x, 1))   # (w-1) % W
    right = jnp.where(w_last, _roll(x, W - 1), _roll(x, -1))     # (w+1) % W
    ws = jnp.concatenate([left, x, right], axis=0)               # kw = 0,1,2
    # H-direction circular taps are exact flat rolls by +-W (mod H*W).
    up = _roll(ws, W)                                            # kh = 0
    down = _roll(ws, -W)                                         # kh = 2
    stacked = jnp.concatenate([up, ws, down], axis=0)            # (9*CIN_PAD, HW)

    # Single MXU matmul: (COUT, 9*CIN_PAD) @ (9*CIN_PAD, HW), bf16 operands,
    # f32 accumulation.  BN (eval) scale is folded into w, BN shift into b.
    out = jnp.dot(w_ref[...], stacked.astype(jnp.bfloat16),
                  preferred_element_type=jnp.float32)
    o_ref[0] = out + b_ref[...]                                  # (COUT, HW)


# ----------------------------- wrapper ---------------------------------------

def basic_conv2d_forward(x_nchw, params):
    """x_nchw: (N, CIN, H, W) float32 -> (N, COUT, H, W) float32."""
    n, c, hh, ww = x_nchw.shape
    hw = hh * ww
    w_k, b_f = params

    # NCHW flattened over (H, W) is already the channel-major, lane-dense
    # (N, C, H*W) layout the kernel wants; just zero-pad C to 8 sublanes.
    x = x_nchw.reshape(n, c, hw)
    x = jnp.pad(x, ((0, 0), (0, CIN_PAD - c), (0, 0)))

    out = pl.pallas_call(
        basic_conv2d_kernel,
        out_shape=jax.ShapeDtypeStruct((n, COUT, hw), jnp.float32),
        grid=(n,),
        in_specs=[
            pl.BlockSpec((1, CIN_PAD, hw), lambda i: (i, 0, 0)),
            # Weight / bias: whole-array blocks with constant index maps, so
            # they are copied to VMEM once and not re-DMA'd per grid step.
            pl.BlockSpec(w_k.shape, lambda i: (0, 0)),
            pl.BlockSpec(b_f.shape, lambda i: (0, 0)),
        ],
        out_specs=pl.BlockSpec((1, COUT, hw), lambda i: (i, 0, 0)),
        compiler_params=pltpu.CompilerParams(
            dimension_semantics=("parallel",)),
    )(x, w_k, b_f)

    return out.reshape(n, COUT, hh, ww)


# --------------------------- deterministic params ----------------------------

def init_params(key, bn=True):
    """Conv + BatchNorm params with BN (eval mode) folded into the conv.

    Returns the weight in the kernel's matmul layout:
      (COUT, 9*CIN_PAD) bfloat16, rows tap-major ((kh*3+kw)*CIN_PAD + ci);
    and the folded bias as (COUT, 1) float32.
    """
    kw_, kb_, kg_, kbe_, km_, kv_ = jax.random.split(key, 6)
    fan_in = CIN * 9
    w = jax.random.normal(kw_, (3, 3, CIN, COUT), jnp.float32) / jnp.sqrt(fan_in)
    b = 0.1 * jax.random.normal(kb_, (COUT,), jnp.float32)
    if bn:
        gamma = 1.0 + 0.1 * jax.random.normal(kg_, (COUT,), jnp.float32)
        beta = 0.1 * jax.random.normal(kbe_, (COUT,), jnp.float32)
        mean = 0.1 * jax.random.normal(km_, (COUT,), jnp.float32)
        var = 1.0 + 0.1 * jax.random.uniform(kv_, (COUT,), jnp.float32)
        scale = gamma / jnp.sqrt(var + EPS)                  # (COUT,)
        shift = beta - mean * scale
    else:
        scale = jnp.ones((COUT,), jnp.float32)
        shift = jnp.zeros((COUT,), jnp.float32)

    w_f = w * scale                                          # fold BN scale
    b_f = b * scale + shift                                  # fold BN shift
    w_f = jnp.pad(w_f, ((0, 0), (0, 0), (0, CIN_PAD - CIN), (0, 0)))  # pad Cin
    # (kh, kw, ci, co) -> (co, kh, kw, ci) -> (co, 9*ci), bf16 for the MXU.
    w_k = jnp.transpose(w_f, (3, 0, 1, 2)).reshape(COUT, 9 * CIN_PAD)
    return w_k.astype(jnp.bfloat16), b_f.reshape(COUT, 1)


def reference_forward(x_nchw, params):
    """Pure-JAX reference of the circular conv + folded BN (same bf16 weights)."""
    w_k, b_f = params
    w = w_k.astype(jnp.float32).reshape(COUT, 3, 3, CIN_PAD)
    x = jnp.pad(x_nchw, ((0, 0), (0, CIN_PAD - x_nchw.shape[1]), (0, 0), (0, 0)))
    out = jnp.zeros((x.shape[0], COUT, H, W), jnp.float32)
    for kh in range(3):
        for kw in range(3):
            xs = jnp.roll(x, shift=(1 - kh, 1 - kw), axis=(2, 3))
            out = out + jnp.einsum('oc,nchw->nohw', w[:, kh, kw, :], xs)
    return out + b_f.reshape(1, COUT, 1, 1)


# ---------------------------------- main --------------------------------------

if __name__ == "__main__":
    key = jax.random.PRNGKey(0)
    kx, kp = jax.random.split(key)
    x = jax.random.normal(kx, (2, CIN, H, W), jnp.float32)   # NCHW input
    params = init_params(kp, bn=True)

    out = jax.jit(basic_conv2d_forward)(x, params)
    out = jax.block_until_ready(out)

    assert out.shape == (2, COUT, H, W), out.shape
    assert bool(jnp.all(jnp.isfinite(out)))

    ref = reference_forward(x, params)
    max_err = float(jnp.max(jnp.abs(out - ref)))
    assert max_err < 0.1, max_err     # bf16 MXU operands vs f32 reference

    print("KERNEL_OK")
</pallas_src>

<mosaic_0001>
module attributes {stable_mosaic.version = 11 : i64} {
  func.func @basic_conv2d_kernel(%arg0: i32, %arg1: memref<1x8x256xf32, #tpu.memory_space<vmem>>, %arg2: memref<32x72xbf16, #tpu.memory_space<vmem>>, %arg3: memref<32x1xf32, #tpu.memory_space<vmem>>, %arg4: memref<1x32x256xf32, #tpu.memory_space<vmem>>) attributes {dimension_semantics = [#tpu.dimension_semantics<parallel>], iteration_bounds = array<i64: 2>, scalar_prefetch = 0 : i64, scratch_operands = 0 : i64, tpu.core_type = #tpu.core_type<tc>, window_params = [{transform_indices = @transform_0, window_bounds = array<i64: 1, 8, 256>}, {pipeline_mode = #tpu.pipeline_mode<synchronous>, transform_indices = @transform_1, window_bounds = array<i64: 32, 72>}, {pipeline_mode = #tpu.pipeline_mode<synchronous>, transform_indices = @transform_2, window_bounds = array<i64: 32, 1>}, {transform_indices = @transform_3, window_bounds = array<i64: 1, 32, 256>}]} {
    %0 = tpu.iota {dimensions = array<i32: 1>} : vector<1x256xi32>
    %c16_i32 = arith.constant 16 : i32
    %c0_i32 = arith.constant 0 : i32
    %1 = arith.cmpi eq, %c16_i32, %c0_i32 : i32
    %c1_i32 = arith.constant 1 : i32
    %2 = arith.select %1, %c1_i32, %c16_i32 : i32
    %3 = vector.broadcast %2 : i32 to vector<1x256xi32>
    %4 = arith.remsi %0, %3 : vector<1x256xi32>
    %c0_i32_0 = arith.constant 0 : i32
    %5 = vector.broadcast %c0_i32_0 : i32 to vector<1x256xi32>
    %6 = arith.cmpi ne, %4, %5 : vector<1x256xi32>
    %c0_i32_1 = arith.constant 0 : i32
    %7 = vector.broadcast %c0_i32_1 : i32 to vector<1x256xi32>
    %8 = arith.cmpi slt, %4, %7 : vector<1x256xi32>
    %c0_i32_2 = arith.constant 0 : i32
    %9 = arith.cmpi slt, %2, %c0_i32_2 : i32
    %10 = vector.broadcast %9 : i1 to vector<1x256xi1>
    %11 = vector.broadcast %10 : vector<1x256xi1> to vector<1x256xi1>
    %12 = arith.xori %8, %11 : vector<1x256xi1>
    %13 = arith.andi %12, %6 : vector<1x256xi1>
    %14 = vector.broadcast %2 : i32 to vector<1x256xi32>
    %15 = arith.addi %4, %14 : vector<1x256xi32>
    %16 = arith.select %13, %15, %4 : vector<1x256xi1>, vector<1x256xi32>
    %c0_i32_3 = arith.constant 0 : i32
    %17 = vector.broadcast %c0_i32_3 : i32 to vector<1x256xi32>
    %18 = arith.cmpi eq, %16, %17 : vector<1x256xi32>
    %c15_i32 = arith.constant 15 : i32
    %19 = vector.broadcast %c15_i32 : i32 to vector<1x256xi32>
    %20 = arith.cmpi eq, %16, %19 : vector<1x256xi32>
    %c0 = arith.constant 0 : index
    %c0_4 = arith.constant 0 : index
    %c0_5 = arith.constant 0 : index
    %21 = vector.load %arg1[%c0, %c0_4, %c0_5] : memref<1x8x256xf32, #tpu.memory_space<vmem>>, vector<1x8x256xf32>
    %22 = vector.shape_cast %21 : vector<1x8x256xf32> to vector<8x256xf32>
    %c241_i32 = arith.constant 241 : i32
    %23 = tpu.dynamic_rotate %22 by %c241_i32 dim 1 : vector<8x256xf32>, i32 -> vector<8x256xf32>
    %c1_i32_6 = arith.constant 1 : i32
    %24 = tpu.dynamic_rotate %22 by %c1_i32_6 dim 1 : vector<8x256xf32>, i32 -> vector<8x256xf32>
    %25 = vector.shape_cast %18 : vector<1x256xi1> to vector<1x256xi1>
    %26 = vector.broadcast %25 : vector<1x256xi1> to vector<8x256xi1>
    %27 = arith.select %26, %23, %24 : vector<8x256xi1>, vector<8x256xf32>
    %c15_i32_7 = arith.constant 15 : i32
    %28 = tpu.dynamic_rotate %22 by %c15_i32_7 dim 1 : vector<8x256xf32>, i32 -> vector<8x256xf32>
    %c255_i32 = arith.constant 255 : i32
    %29 = tpu.dynamic_rotate %22 by %c255_i32 dim 1 : vector<8x256xf32>, i32 -> vector<8x256xf32>
    %30 = vector.shape_cast %20 : vector<1x256xi1> to vector<1x256xi1>
    %31 = vector.broadcast %30 : vector<1x256xi1> to vector<8x256xi1>
    %32 = arith.select %31, %28, %29 : vector<8x256xi1>, vector<8x256xf32>
    %33 = tpu.concatenate %27, %22, %32 in 0 : vector<8x256xf32>, vector<8x256xf32>, vector<8x256xf32> -> vector<24x256xf32>
    %c16_i32_8 = arith.constant 16 : i32
    %34 = tpu.dynamic_rotate %33 by %c16_i32_8 dim 1 : vector<24x256xf32>, i32 -> vector<24x256xf32>
    %c240_i32 = arith.constant 240 : i32
    %35 = tpu.dynamic_rotate %33 by %c240_i32 dim 1 : vector<24x256xf32>, i32 -> vector<24x256xf32>
    %36 = tpu.concatenate %34, %33, %35 in 0 : vector<24x256xf32>, vector<24x256xf32>, vector<24x256xf32> -> vector<72x256xf32>
    %c0_9 = arith.constant 0 : index
    %c0_10 = arith.constant 0 : index
    %37 = vector.load %arg2[%c0_9, %c0_10] : memref<32x72xbf16, #tpu.memory_space<vmem>>, vector<32x72xbf16>
    %38 = arith.truncf %36 : vector<72x256xf32> to vector<72x256xbf16>
    %cst = arith.constant dense<0.000000e+00> : vector<32x256xf32>
    %39 = tpu.matmul %37, %38, %cst {dimension_numbers = #tpu.dot_dimension_numbers<[1], [0], [0], [1], [0, 0, 1, 1], [], []>} : vector<32x72xbf16>, vector<72x256xbf16>, vector<32x256xf32> -> vector<32x256xf32>
    %c0_11 = arith.constant 0 : index
    %c0_12 = arith.constant 0 : index
    %40 = vector.load %arg3[%c0_11, %c0_12] : memref<32x1xf32, #tpu.memory_space<vmem>>, vector<32x1xf32>
    %41 = vector.broadcast %40 : vector<32x1xf32> to vector<32x256xf32>
    %42 = arith.addf %39, %41 : vector<32x256xf32>
    %c0_13 = arith.constant 0 : index
    %c0_14 = arith.constant 0 : index
    %c0_15 = arith.constant 0 : index
    %43 = vector.load %arg4[%c0_13, %c0_14, %c0_15] : memref<1x32x256xf32, #tpu.memory_space<vmem>>, vector<1x32x256xf32>
    %44 = vector.shape_cast %43 : vector<1x32x256xf32> to vector<32x256xf32>
    %45 = vector.shape_cast %42 : vector<32x256xf32> to vector<1x32x256xf32>
    tpu.vector_store %arg4[%c0_13, %c0_14, %c0_15], %45 {strides = array<i32>} : memref<1x32x256xf32, #tpu.memory_space<vmem>>, vector<1x32x256xf32>,
    return
  }
  func.func @transform_0(%arg0: i32) -> (i32, i32, i32) {
    %c0_i32 = arith.constant 0 : i32
    %c0_i32_0 = arith.constant 0 : i32
    %c0_i32_1 = arith.constant 0 : i32
    return %arg0, %c0_i32, %c0_i32_0 : i32, i32, i32
  }
  func.func @transform_1(%arg0: i32) -> (i32, i32) {
    %c0_i32 = arith.constant 0 : i32
    %c0_i32_0 = arith.constant 0 : i32
    %c0_i32_1 = arith.constant 0 : i32
    return %c0_i32, %c0_i32_0 : i32, i32
  }
  func.func @transform_2(%arg0: i32) -> (i32, i32) {
    %c0_i32 = arith.constant 0 : i32
    %c0_i32_0 = arith.constant 0 : i32
    %c0_i32_1 = arith.constant 0 : i32
    return %c0_i32, %c0_i32_0 : i32, i32
  }
  func.func @transform_3(%arg0: i32) -> (i32, i32, i32) {
    %c0_i32 = arith.constant 0 : i32
    %c0_i32_0 = arith.constant 0 : i32
    %c0_i32_1 = arith.constant 0 : i32
    return %arg0, %c0_i32, %c0_i32_0 : i32, i32, i32
  }
}

</mosaic_0001>

<bundles_post_ra>
// kernel: basic_conv2d_forward.1
= control target key start
LH: loop header
LB: loop body
LE: loop exit
PB: predicated region body
PF: predicated region fallthrough
CT: control target
= control target key end

     0   :  { %s593_s12 = smov 0   ;;  %s700_s0 = inlined_call_operand.vmem [shape: f32[2,8,256], index: 0, kind: input, shape index: {}]   ;;  %s701_s1 = inlined_call_operand.vmem [shape: bf16[32,72], index: 1, kind: input, shape index: {}]   ;;  %s702_s2 = inlined_call_operand.vmem [shape: f32[32,1], index: 2, kind: input, shape index: {}]   ;;  %s703_s3 = inlined_call_operand.vmem [shape: f32[2,32,256], index: 3, kind: output, shape index: {}]  }
   0x1 LB: > { %s461_s13 = sadd.s32 4294967295, %s564_s12   ;;  %p465_p0 = scmp.ge.s32.totalorder %s564_s12, 1  ;;  %s564_s12 = sphi %s593_s12, %s13_s12  }
   0x2   : > { %p137_p1 = scmp.lt.s32.totalorder %s564_s12, 3 }
   0x4   : > { %p138_p2 = pnand %p465_p0, %p137_p1 }
   0x5   : > { %p161_p3 = scmp.lt.s32.totalorder (!%p138_p2), %s461_s13, 1  ;;  %s566_s18 = smov (!%p138_p2), 113  }
   0x6   : > { %141 = sbr.rel (%p138_p2) target bundleno = 484 (0x1e4), region = 32  ;;  %s567_s19 = smov (!%p138_p2), 15  }
   0x7   : > { %s568_s20 = smov (!%p138_p2), 1   ;;  %s569_s21 = smov (!%p138_p2), 127  }
   0x8   : > { %s570_s22 = smov (!%p138_p2), 112   ;;  %s571_s23 = smov (!%p138_p2), 16  }
   0xb   : > { %s705_s13 = smov (!%p161_p3, %s461_s13), 1  ;;  %v172_v3 = vlaneseq  ;;  %v572_v35 = vmov 0   ;;  %v298_v36 = vld [vmem:[%s702_s2 + $0x8] sm:$0xff]  ;;  %v297_v37 = vld [vmem:[%s702_s2] sm:$0xff]  ;;  %v299_v38 = vld [vmem:[%s702_s2 + $0x10] sm:$0xff]  ;;  %vm338_vm9 = vcmask 1043456  }
   0xc   : > { %s477_s14 = sshll.u32 %s705_s13, 4  ;;  %377 = vmatprep.mubr.bf16.mxu0 %v572_v35  ;;  %387 = vmatprep.mubr.bf16.mxu1 %v572_v35  ;;  %v300_v39 = vld [vmem:[%s702_s2 + $0x18] sm:$0xff]  ;;  %vm331_vm11 = vcmask 588800   ;;  %s478_s9 = sshll.u32 %s705_s13, 6 }
   0xd   : > { %s165_s17 = scalar_lea.vmem %s700_s0, %s477_s14  ;;  %v613_v4 = vand.u32 127, %v172_v3  ;;  %555 = vset.pattern.permute.xlu1 %v572_v35  ;;  %554 = vset.pattern.permute.xlu0 %v572_v35  ;;  %s170_s14 = scalar_lea.vmem %s703_s3, %s478_s9 }
   0xe   : > { %v607_v0 = vld [vmem:[%s165_s17] sm:$0xff]  ;;  %v609_v1 = vld [vmem:[%s165_s17 + $0x8] sm:$0xff] }
   0xf   : > { %v514_v2 = vpack.i.bf16 %v609_v1, %v607_v0  ;;  %v174_v5 = vadd.s32 128, %v613_v4  ;;  %v179_v8 = vand.u32 15, %v613_v4  ;;  %vm209_vm0 = vcmp.lt.s32.totalorder %v613_v4, 113 }
  0x10   : > { %vm229_vm1 = vcmp.lt.s32.totalorder %v613_v4, 15  ;;  %vm216_vm2 = vcmp.lt.s32.totalorder %v613_v4, 1  ;;  %vm236_vm3 = vcmp.lt.s32.totalorder %v613_v4, 127  ;;  %vm276_vm8 = vcmp.lt.s32.totalorder %v613_v4, 112 }
  0x11   : > { %515 = vrot.lane.b32.xlu1 %v514_v2, %s566_s18  ;;  %505 = vrot.lane.b32.xlu0 %v514_v2, %s567_s19  ;;  %v186_v9 = vand.u32 15, %v174_v5  ;;  %vm199_vm4 = vcmp.eq.s32.totalorder %v179_v8, 0  ;;  %vm201_vm5 = vcmp.eq.s32.totalorder %v179_v8, 15  ;;  %vm257_vm10 = vcmp.lt.s32.totalorder %v613_v4, 16 }
  0x13   : > { %vm202_vm6 = vcmp.eq.s32.totalorder %v186_v9, 15  ;;  %vm200_vm7 = vcmp.eq.s32.totalorder %v186_v9, 0 }
  0x15   : > { %520 = vrot.lane.b32.xlu1 %v514_v2, %s568_s20  ;;  %510 = vrot.lane.b32.xlu0 %v514_v2, %s569_s21 }
  0x83   : > { %v516_v6 = vpop.permute.xlu1 %515  ;;  %v506_v7 = vpop.permute.xlu0 %505 }
  0x84   : > { %v518_v10 = vunpack.i.h.bf16 %v516_v6  ;;  %v517_v11 = vunpack.i.l.bf16 %v516_v6  ;;  %v508_v12 = vunpack.i.h.bf16 %v506_v7  ;;  %v507_v13 = vunpack.i.l.bf16 %v506_v7 }
  0x86   : > { %v210_v14 = vsel %vm209_vm0, %v517_v11, %v518_v10  ;;  %v211_v21 = vsel %vm209_vm0, %v518_v10, %v517_v11  ;;  %v230_v22 = vsel %vm229_vm1, %v507_v13, %v508_v12  ;;  %v231_v23 = vsel %vm229_vm1, %v508_v12, %v507_v13 }
  0x87   : > { %v521_v15 = vpop.permute.xlu1 %520  ;;  %v511_v16 = vpop.permute.xlu0 %510 }
  0x88   : > { %v523_v17 = vunpack.i.h.bf16 %v521_v15  ;;  %v522_v18 = vunpack.i.l.bf16 %v521_v15  ;;  %v513_v19 = vunpack.i.h.bf16 %v511_v16  ;;  %v512_v20 = vunpack.i.l.bf16 %v511_v16 }
  0x8a   : > { %v217_v24 = vsel %vm216_vm2, %v522_v18, %v523_v17  ;;  %v218_v25 = vsel %vm216_vm2, %v523_v17, %v522_v18  ;;  %v237_v26 = vsel %vm236_vm3, %v512_v20, %v513_v19  ;;  %v238_v27 = vsel %vm236_vm3, %v513_v19, %v512_v20  ;;  %v556_v18 = vld [vmem:[%s701_s1] sm:$0xff]   ;;  %v557_v19 = vld [vmem:[%s701_s1 + $0x8] sm:$0xff]  }
  0x8b   : > { %v633_v28 = vsel %vm199_vm4, %v210_v14, %v218_v25  ;;  %v635_v29 = vsel %vm201_vm5, %v231_v23, %v237_v26  ;;  %v244_v30 = vsel %vm202_vm6, %v230_v22, %v238_v27  ;;  %v640_v33 = vsel %vm200_vm7, %v211_v21, %v217_v24 }
  0x8c   : > { %v529_v31 = vpack.i.bf16 %v607_v0, %v633_v28  ;;  %v524_v32 = vpack.i.bf16 %v244_v30, %v635_v29  ;;  %v534_v34 = vpack.i.bf16 %v609_v1, %v640_v33  ;;  %v292_v3 = vpack.c.bf16 %v244_v30, %v609_v1 }
  0x8d   : > { %v291_v10 = vpack.c.bf16 %v635_v29, %v607_v0 }
  0x8e   : > { %530 = vrot.lane.b32.xlu1 %v529_v31, %s570_s22  ;;  %525 = vrot.lane.b32.xlu0 %v524_v32, %s570_s22 }
  0x92   : > { %540 = vrot.lane.b32.xlu1 %v524_v32, %s571_s23  ;;  %535 = vrot.lane.b32.xlu0 %v534_v34, %s570_s22 }
  0x96   : > { %550 = vrot.lane.b32.xlu1 %v534_v34, %s571_s23  ;;  %545 = vrot.lane.b32.xlu0 %v529_v31, %s571_s23 }
  0x9a   : > { %308 = vperm.xlu1 %555, %v298_v36   ;;  %303 = vperm.xlu0 %554, %v297_v37  }
  0x9e   : > { %313 = vperm.xlu1 %555, %v299_v38   ;;  %318 = vperm.xlu0 %554, %v300_v39  }
 0x100   : > { %v531_v40 = vpop.permute.xlu1 %530  ;;  %v526_v41 = vpop.permute.xlu0 %525 }
 0x101   : > { %v528_v42 = vunpack.i.h.bf16 %v526_v41  ;;  %v527_v43 = vunpack.i.l.bf16 %v526_v41  ;;  %v533_v50 = vunpack.i.h.bf16 %v531_v40  ;;  %v532_v51 = vunpack.i.l.bf16 %v531_v40 }
 0x103   : > { %v282_v44 = vsel %vm276_vm8, %v528_v42, %v527_v43  ;;  %v279_v45 = vsel %vm276_vm8, %v527_v43, %v528_v42 }
 0x104   : > { %v541_v46 = vpop.permute.xlu1 %540  ;;  %v536_v47 = vpop.permute.xlu0 %535  ;;  %v296_v48 = vpack.c.bf16 %v282_v44, %v282_v44  ;;  %v295_v49 = vpack.c.bf16 %v279_v45, %v279_v45 }
 0x105   : > { %v538_v52 = vunpack.i.h.bf16 %v536_v47  ;;  %v537_v53 = vunpack.i.l.bf16 %v536_v47  ;;  %v543_v54 = vunpack.i.h.bf16 %v541_v46  ;;  %v542_v56 = vunpack.i.l.bf16 %v541_v46 }
 0x106   : > { %472 = vmatprep.subr.msk.bf16.mxu0 %vm338_vm9, %v296_v48  ;;  %479 = vmatprep.subr.msk.bf16.mxu1 %vm338_vm9, %v296_v48  ;;  %v340_v55 = vsel %vm338_vm9, %v295_v49, 0 }
 0x107   : > { %352 = vmatpush1.bf16.msra.mxu0 %v340_v55  ;;  %484 = vmatpush1.bf16.msra.mxu1 %v340_v55  ;;  %v280_v57 = vsel %vm276_vm8, %v537_v53, %v532_v51  ;;  %v281_v58 = vsel %vm276_vm8, %v538_v52, %v533_v50  ;;  %v277_v59 = vsel %vm276_vm8, %v532_v51, %v537_v53 }
 0x108   : > { %v294_v60 = vpack.c.bf16 %v281_v58, %v280_v57  ;;  %v278_v61 = vsel %vm276_vm8, %v533_v50, %v538_v52  ;;  %v551_v62 = vpop.permute.xlu1 %550  ;;  %v546_v63 = vpop.permute.xlu0 %545  ;;  %v260_v5 = vsel %vm257_vm10, %v542_v56, %v543_v54  ;;  %v263_v12 = vsel %vm257_vm10, %v543_v54, %v542_v56 }
 0x109   : > { %v293_v2 = vpack.c.bf16 %v278_v61, %v277_v59  ;;  %v553_v6 = vunpack.i.h.bf16 %v551_v62  ;;  %v552_v7 = vunpack.i.l.bf16 %v551_v62  ;;  %v548_v8 = vunpack.i.h.bf16 %v546_v63 }
 0x10a   : > { %353 = vmatprep.subr.bf16.mxu0 %v294_v60  ;;  %480 = vmatprep.subr.bf16.mxu1 %v294_v60  ;;  %v547_v9 = vunpack.i.l.bf16 %v546_v63  ;;  %v290_v11 = vpack.c.bf16 %v640_v33, %v260_v5  ;;  %v289_v14 = vpack.c.bf16 %v633_v28, %v263_v12 }
 0x10b   : > { %354 = vmatpush1.bf16.msra.mxu0 %v293_v2  ;;  %485 = vmatpush1.bf16.msra.mxu1 %v293_v2  ;;  %v259_v13 = vsel %vm257_vm10, %v548_v8, %v553_v6  ;;  %v262_v16 = vsel %vm257_vm10, %v553_v6, %v548_v8 }
 0x10c   : > { %355 = vmatprep.subr.bf16.mxu0 %v292_v3  ;;  %481 = vmatprep.subr.bf16.mxu1 %v292_v3  ;;  %v258_v1 = vsel %vm257_vm10, %v547_v9, %v552_v7  ;;  %v261_v0 = vsel %vm257_vm10, %v552_v7, %v547_v9 }
 0x10d   : > { %v288_v15 = vpack.c.bf16 %v259_v13, %v258_v1  ;;  %v287_v17 = vpack.c.bf16 %v262_v16, %v261_v0 }
 0x10f   : > { %356 = vmatpush1.bf16.msra.mxu0 %v291_v10  ;;  %486 = vmatpush1.bf16.msra.mxu1 %v291_v10 }
 0x110   : > { %357 = vmatprep.subr.bf16.mxu0 %v290_v11  ;;  %482 = vmatprep.subr.bf16.mxu1 %v290_v11 }
 0x113   : > { %358 = vmatpush1.bf16.msra.mxu0 %v289_v14  ;;  %487 = vmatpush1.bf16.msra.mxu1 %v289_v14 }
 0x114   : > { %359 = vmatprep.subr.bf16.mxu0 %v288_v15  ;;  %483 = vmatprep.subr.bf16.mxu1 %v288_v15 }
 0x115   : > { %v309_v4 = vpop.permute.xlu1 %308  ;;  %v304_v20 = vpop.permute.xlu0 %303 }
 0x117   : > { %360 = vmatpush1.bf16.msra.mxu0 %v287_v17  ;;  %488 = vmatpush1.bf16.msra.mxu1 %v287_v17 }
 0x119   : > { %v314_v21 = vpop.permute.xlu1 %313  ;;  %v319_v28 = vpop.permute.xlu0 %318 }
 0x11a   : > { %473 = vmatmul.mubr.msk.bf16.vlgmr.msra.gmra.mxu0 %vm331_vm11, %v556_v18  ;;  %474 = vmatmul.mubr.msk.bf16.vlgmr.msra.gmra.mxu1 %vm331_vm11, %v557_v19 }
 0x1da   : > { %v379_v22 = vpop.f32.mrf.mxu0  ;;  %v389_v23 = vpop.f32.mrf.mxu1 }
 0x1db   : > { %v380_v24 = vadd.f32 %v379_v22, %v304_v20  ;;  %v390_v25 = vadd.f32 %v389_v23, %v314_v21 }
 0x1dc   : > { %v381_v26 = vpop.f32.mrf.mxu0  ;;  %v391_v27 = vpop.f32.mrf.mxu1 }
 0x1dd   : > { %398 = vst [vmem:[%s170_s14] sm:$0xff] %v380_v24  ;;  %402 = vst [vmem:[%s170_s14 + $0x20] sm:$0xff] %v390_v25  ;;  %v382_v29 = vadd.f32 %v381_v26, %v304_v20  ;;  %v392_v30 = vadd.f32 %v391_v27, %v314_v21 }
 0x1de   : > { %v383_v31 = vpop.f32.mrf.mxu0  ;;  %v393_v32 = vpop.f32.mrf.mxu1 }
 0x1df   : > { %399 = vst [vmem:[%s170_s14 + $0x8] sm:$0xff] %v382_v29  ;;  %403 = vst [vmem:[%s170_s14 + $0x28] sm:$0xff] %v392_v30  ;;  %v384_v33 = vadd.f32 %v383_v31, %v309_v4  ;;  %v394_v34 = vadd.f32 %v393_v32, %v319_v28 }
 0x1e0   : > { %v385_v35 = vpop.f32.mrf.mxu0  ;;  %v395_v36 = vpop.f32.mrf.mxu1 }
 0x1e1   : > { %400 = vst [vmem:[%s170_s14 + $0x10] sm:$0xff] %v384_v33  ;;  %404 = vst [vmem:[%s170_s14 + $0x30] sm:$0xff] %v394_v34  ;;  %v386_v37 = vadd.f32 %v385_v35, %v309_v4  ;;  %v396_v38 = vadd.f32 %v395_v36, %v319_v28 }
 0x1e3   : > { %401 = vst [vmem:[%s170_s14 + $0x18] sm:$0xff] %v386_v37  ;;  %405 = vst [vmem:[%s170_s14 + $0x38] sm:$0xff] %v396_v38 }
 0x1e4 PF: > { %s13_s12 = sadd.s32 1, %s564_s12  }
 0x1e5   : > { %p10_p4 = scmp.ge.s32.totalorder %s13_s12, 4  }
 0x1e7   :  { %12 = sbr.rel (!%p10_p4) target bundleno = 1 (0x1), region = 62 }

</bundles_post_ra>
